<compile_context>
chip_gen: v7x
topology: tpu7x:2x2x1
jax: 0.10.0
libtpu: 0.0.40
codegen_flags: <defaults>
</compile_context>

<pallas_src>
from functools import partial

import jax
import jax.numpy as jnp
from jax import lax
from jax.experimental import pallas as pl
from jax.experimental.pallas import tpu as pltpu

_LANE = 128
_SUBLANE = 8
_BN_EPS = 1e-5


def _round_up(x, m):
    return ((x + m - 1) // m) * m


def actor_kernel(x_ref, w0_ref, wh_ref, bh_ref, w3t_ref, b3_ref, out_ref):
    """One batch tile of the fused Actor forward (eval mode).

    x_ref   : (TB, NSP)     f32   input states (NSP = n_states padded to 8)
    w0_ref  : (NSP, F)      bf16  layer-0 weight
    wh_ref  : (2, F, F)     bf16  layer-1/2 weights (BN folded)
    bh_ref  : (3, F)        f32   layer-0/1/2 biases (BN folded)
    w3t_ref : (APAD, F)     bf16  transposed output-layer weight (BN folded)
    b3_ref  : (APAD, 1)     f32   output-layer bias (BN folded)
    out_ref : (APAD, TB)    f32   sigmoid output, transposed (actions on
                                  sublanes, batch on lanes)
    """
    # Layer 0: Linear -> LeakyReLU(0.2).  (BN0 is folded into layer 1.)
    h = jnp.dot(x_ref[...].astype(jnp.bfloat16), w0_ref[...],
                preferred_element_type=jnp.float32) + bh_ref[0:1, :]
    h = jnp.maximum(h, 0.2 * h)

    # Layer 1 (+BN0 folded): Linear -> Tanh.  Dropout = identity in eval mode.
    h = jnp.dot(h.astype(jnp.bfloat16), wh_ref[0],
                preferred_element_type=jnp.float32) + bh_ref[1:2, :]
    h = jnp.tanh(h)

    # Layer 2 (+BN1 folded): Linear -> Tanh.  Dropout = identity in eval mode.
    h = jnp.dot(h.astype(jnp.bfloat16), wh_ref[1],
                preferred_element_type=jnp.float32) + bh_ref[2:3, :]
    h = jnp.tanh(h)

    # Output layer (+BN2 folded): Linear -> Sigmoid, computed transposed:
    #   out^T = W3^T @ h^T  (MXU contraction over the last dim of both),
    # so the store is (APAD sublanes, TB lanes) -> lane-dense, tiny writeback.
    out_t = lax.dot_general(
        w3t_ref[...], h.astype(jnp.bfloat16),
        (((1,), (1,)), ((), ())),
        preferred_element_type=jnp.float32) + b3_ref[...]
    out_ref[...] = jax.nn.sigmoid(out_t)


def make_actor_params(key, n_states, n_actions, hidden_sizes):
    """Raw parameters mirroring PyTorch Actor._init_weights (eval mode):
       Linear weight ~ N(0, 0.01) stored transposed as (in, out),
       bias ~ U(-0.1, 0.1); BatchNorm1d at PyTorch defaults."""
    dims = [n_states] + list(hidden_sizes) + [n_actions]
    params = {}
    for li in range(4):
        d_in, d_out = dims[li], dims[li + 1]
        key, kw, kb = jax.random.split(key, 3)
        params[f"w{li}"] = (0.01 * jax.random.normal(kw, (d_out, d_in), jnp.float32)).T
        params[f"b{li}"] = jax.random.uniform(
            kb, (d_out,), jnp.float32, minval=-0.1, maxval=0.1)
        if li < 3:
            params[f"gamma{li}"] = jnp.ones((d_out,), jnp.float32)
            params[f"beta{li}"] = jnp.zeros((d_out,), jnp.float32)
            params[f"mean{li}"] = jnp.zeros((d_out,), jnp.float32)
            params[f"var{li}"] = jnp.ones((d_out,), jnp.float32)
    return params


def fold_and_pack_params(params, n_states, n_actions, hidden_sizes):
    """Fold eval-mode BatchNorm_k into Linear_{k+1} (exact), zero-pad hidden
    dims to a common lane-dense F, keep the input dim at a sublane multiple
    and the output dim at one sublane group, and cast weights to bf16."""
    h0, h1, h2 = hidden_sizes
    F = _round_up(max(h0, h1, h2), _LANE)
    NSP = _round_up(n_states, _SUBLANE)
    APAD = _round_up(n_actions, _SUBLANE)

    def bn_scale_shift(li):
        s = params[f"gamma{li}"] / jnp.sqrt(params[f"var{li}"] + _BN_EPS)
        t = params[f"beta{li}"] - params[f"mean{li}"] * s
        return s, t

    # (a*s + t) @ W + b == a @ (s[:,None]*W) + (t @ W + b)
    s0, t0 = bn_scale_shift(0)
    s1, t1 = bn_scale_shift(1)
    s2, t2 = bn_scale_shift(2)

    w0, b0 = params["w0"], params["b0"]
    w1 = s0[:, None] * params["w1"]
    b1 = t0 @ params["w1"] + params["b1"]
    w2 = s1[:, None] * params["w2"]
    b2 = t1 @ params["w2"] + params["b2"]
    w3 = s2[:, None] * params["w3"]
    b3 = t2 @ params["w3"] + params["b3"]

    def pad2(w, r, c):
        return jnp.zeros((r, c), jnp.float32).at[:w.shape[0], :w.shape[1]].set(w)

    def pad1(b, n):
        return jnp.zeros((n,), jnp.float32).at[:b.shape[0]].set(b)

    packed = {
        "w0": pad2(w0, NSP, F).astype(jnp.bfloat16),
        "wh": jnp.stack([pad2(w1, F, F), pad2(w2, F, F)]).astype(jnp.bfloat16),
        "bh": jnp.stack([pad1(b0, F), pad1(b1, F), pad1(b2, F)]),
        "w3t": pad2(w3.T, APAD, F).astype(jnp.bfloat16),
        "b3": pad1(b3, APAD)[:, None],
    }
    return packed


@partial(jax.jit, static_argnames=("n_actions",))
def actor_forward(states, packed, n_actions):
    """Fused Actor forward.  One dispatch: pad + pallas_call + slice."""
    batch, n_states = states.shape
    w0, wh, bh, w3t, b3 = (packed["w0"], packed["wh"], packed["bh"],
                           packed["w3t"], packed["b3"])
    NSP, F = w0.shape
    APAD = w3t.shape[0]

    # Batch tile: multiple of 8 sublanes, capped at 512 (amortizes the
    # ~0.35 us/step overhead; VMEM use is trivial even on v7x's 64 MiB).
    # For mid-size batches aim for >=2 grid steps so ("parallel",) can shard
    # across v7x's two TensorCores.
    tb = min(512, max(_SUBLANE, _round_up(-(-batch // 2), _SUBLANE)))
    b_pad = _round_up(batch, tb)

    # Zero-pad batch to the tile and features only to a sublane multiple
    # (no 128-lane feature padding of x -> 8x less input DMA).
    x = jnp.zeros((b_pad, NSP), jnp.float32).at[:batch, :n_states].set(states)

    out_t = pl.pallas_call(
        actor_kernel,
        out_shape=jax.ShapeDtypeStruct((APAD, b_pad), jnp.float32),
        grid_spec=pltpu.PrefetchScalarGridSpec(
            num_scalar_prefetch=0,
            grid=(b_pad // tb,),
            in_specs=[
                pl.BlockSpec((tb, NSP), lambda i: (i, 0)),      # x tile
                pl.BlockSpec((NSP, F), lambda i: (0, 0)),       # W0 (resident)
                pl.BlockSpec((2, F, F), lambda i: (0, 0, 0)),   # W1,W2 (resident)
                pl.BlockSpec((3, F), lambda i: (0, 0)),         # b0..b2 (resident)
                pl.BlockSpec((APAD, F), lambda i: (0, 0)),      # W3^T (resident)
                pl.BlockSpec((APAD, 1), lambda i: (0, 0)),      # b3 (resident)
            ],
            out_specs=pl.BlockSpec((APAD, tb), lambda i: (0, i)),
        ),
        compiler_params=pltpu.CompilerParams(
            dimension_semantics=("parallel",),
        ),
    )(x, w0, wh, bh, w3t, b3)

    # Transposed kernel output -> (batch, n_actions).  Stays inside the jit.
    return out_t[:n_actions, :batch].T


def actor_reference(states, params):
    """Pure-JAX f32 reference (unfolded, unpadded) for sanity checking."""
    def bn(h, li):
        s = params[f"gamma{li}"] / jnp.sqrt(params[f"var{li}"] + _BN_EPS)
        t = params[f"beta{li}"] - params[f"mean{li}"] * s
        return h * s + t

    h = states @ params["w0"] + params["b0"]
    h = jnp.where(h >= 0.0, h, 0.2 * h)
    h = bn(h, 0)
    h = jnp.tanh(h @ params["w1"] + params["b1"])
    h = bn(h, 1)
    h = jnp.tanh(h @ params["w2"] + params["b2"])
    h = bn(h, 2)
    h = h @ params["w3"] + params["b3"]
    return jax.nn.sigmoid(h)


if __name__ == "__main__":
    key = jax.random.PRNGKey(0)
    n_states, n_actions = 16, 4
    hidden_sizes = [32, 32, 32]
    batch = 8

    key, kx, kp = jax.random.split(key, 3)
    states = jax.random.normal(kx, (batch, n_states), jnp.float32)
    params = make_actor_params(kp, n_states, n_actions, hidden_sizes)
    packed = fold_and_pack_params(params, n_states, n_actions, hidden_sizes)

    out = actor_forward(states, packed, n_actions)
    out = jax.block_until_ready(out)

    ref = actor_reference(states, params)
    assert out.shape == (batch, n_actions)
    # bf16 weights + f32 accumulation: compare against the f32 reference with
    # a correspondingly relaxed tolerance.
    assert jnp.allclose(out, ref, atol=1e-2, rtol=1e-2), "Pallas kernel mismatch vs reference"

    print("KERNEL_OK")
</pallas_src>

<mosaic_0001>
module attributes {stable_mosaic.version = 11 : i64} {
  func.func @actor_kernel(%arg0: i32, %arg1: memref<8x16xf32, #tpu.memory_space<vmem>>, %arg2: memref<16x128xbf16, #tpu.memory_space<vmem>>, %arg3: memref<2x128x128xbf16, #tpu.memory_space<vmem>>, %arg4: memref<3x128xf32, #tpu.memory_space<vmem>>, %arg5: memref<8x128xbf16, #tpu.memory_space<vmem>>, %arg6: memref<8x1xf32, #tpu.memory_space<vmem>>, %arg7: memref<8x8xf32, #tpu.memory_space<vmem>>) attributes {dimension_semantics = [#tpu.dimension_semantics<parallel>], iteration_bounds = array<i64: 1>, scalar_prefetch = 0 : i64, scratch_operands = 0 : i64, tpu.core_type = #tpu.core_type<tc>, window_params = [{transform_indices = @transform_0, window_bounds = array<i64: 8, 16>}, {pipeline_mode = #tpu.pipeline_mode<synchronous>, transform_indices = @transform_1, window_bounds = array<i64: 16, 128>}, {pipeline_mode = #tpu.pipeline_mode<synchronous>, transform_indices = @transform_2, window_bounds = array<i64: 2, 128, 128>}, {pipeline_mode = #tpu.pipeline_mode<synchronous>, transform_indices = @transform_3, window_bounds = array<i64: 3, 128>}, {pipeline_mode = #tpu.pipeline_mode<synchronous>, transform_indices = @transform_4, window_bounds = array<i64: 8, 128>}, {pipeline_mode = #tpu.pipeline_mode<synchronous>, transform_indices = @transform_5, window_bounds = array<i64: 8, 1>}, {transform_indices = @transform_6, window_bounds = array<i64: 8, 8>}]} {
    %c0 = arith.constant 0 : index
    %c0_0 = arith.constant 0 : index
    %0 = vector.load %arg1[%c0, %c0_0] : memref<8x16xf32, #tpu.memory_space<vmem>>, vector<8x16xf32>
    %1 = arith.truncf %0 : vector<8x16xf32> to vector<8x16xbf16>
    %c0_1 = arith.constant 0 : index
    %c0_2 = arith.constant 0 : index
    %2 = vector.load %arg2[%c0_1, %c0_2] : memref<16x128xbf16, #tpu.memory_space<vmem>>, vector<16x128xbf16>
    %cst = arith.constant dense<0.000000e+00> : vector<8x128xf32>
    %3 = tpu.matmul %1, %2, %cst {dimension_numbers = #tpu.dot_dimension_numbers<[1], [0], [0], [1], [0, 0, 1, 1], [], []>} : vector<8x16xbf16>, vector<16x128xbf16>, vector<8x128xf32> -> vector<8x128xf32>
    %c0_3 = arith.constant 0 : index
    %c0_4 = arith.constant 0 : index
    %4 = vector.load %arg4[%c0_3, %c0_4] : memref<3x128xf32, #tpu.memory_space<vmem>>, vector<1x128xf32>
    %5 = vector.broadcast %4 : vector<1x128xf32> to vector<8x128xf32>
    %6 = arith.addf %3, %5 : vector<8x128xf32>
    %cst_5 = arith.constant 2.000000e-01 : f32
    %7 = vector.broadcast %cst_5 : f32 to vector<8x128xf32>
    %8 = arith.mulf %7, %6 : vector<8x128xf32>
    %9 = arith.maximumf %6, %8 : vector<8x128xf32>
    %10 = arith.truncf %9 : vector<8x128xf32> to vector<8x128xbf16>
    %c0_6 = arith.constant 0 : index
    %c0_7 = arith.constant 0 : index
    %c0_8 = arith.constant 0 : index
    %11 = vector.load %arg3[%c0_6, %c0_7, %c0_8] : memref<2x128x128xbf16, #tpu.memory_space<vmem>>, vector<1x128x128xbf16>
    %12 = vector.shape_cast %11 : vector<1x128x128xbf16> to vector<128x128xbf16>
    %cst_9 = arith.constant dense<0.000000e+00> : vector<8x128xf32>
    %13 = tpu.matmul %10, %12, %cst_9 {dimension_numbers = #tpu.dot_dimension_numbers<[1], [0], [0], [1], [0, 0, 1, 1], [], []>} : vector<8x128xbf16>, vector<128x128xbf16>, vector<8x128xf32> -> vector<8x128xf32>
    %c1 = arith.constant 1 : index
    %c0_10 = arith.constant 0 : index
    %14 = vector.load %arg4[%c1, %c0_10] : memref<3x128xf32, #tpu.memory_space<vmem>>, vector<1x128xf32>
    %15 = vector.broadcast %14 : vector<1x128xf32> to vector<8x128xf32>
    %16 = arith.addf %13, %15 : vector<8x128xf32>
    %17 = math.tanh %16 : vector<8x128xf32>
    %18 = arith.truncf %17 : vector<8x128xf32> to vector<8x128xbf16>
    %c1_11 = arith.constant 1 : index
    %c0_12 = arith.constant 0 : index
    %c0_13 = arith.constant 0 : index
    %19 = vector.load %arg3[%c1_11, %c0_12, %c0_13] : memref<2x128x128xbf16, #tpu.memory_space<vmem>>, vector<1x128x128xbf16>
    %20 = vector.shape_cast %19 : vector<1x128x128xbf16> to vector<128x128xbf16>
    %cst_14 = arith.constant dense<0.000000e+00> : vector<8x128xf32>
    %21 = tpu.matmul %18, %20, %cst_14 {dimension_numbers = #tpu.dot_dimension_numbers<[1], [0], [0], [1], [0, 0, 1, 1], [], []>} : vector<8x128xbf16>, vector<128x128xbf16>, vector<8x128xf32> -> vector<8x128xf32>
    %c2 = arith.constant 2 : index
    %c0_15 = arith.constant 0 : index
    %22 = vector.load %arg4[%c2, %c0_15] : memref<3x128xf32, #tpu.memory_space<vmem>>, vector<1x128xf32>
    %23 = vector.broadcast %22 : vector<1x128xf32> to vector<8x128xf32>
    %24 = arith.addf %21, %23 : vector<8x128xf32>
    %25 = math.tanh %24 : vector<8x128xf32>
    %c0_16 = arith.constant 0 : index
    %c0_17 = arith.constant 0 : index
    %26 = vector.load %arg5[%c0_16, %c0_17] : memref<8x128xbf16, #tpu.memory_space<vmem>>, vector<8x128xbf16>
    %27 = arith.truncf %25 : vector<8x128xf32> to vector<8x128xbf16>
    %cst_18 = arith.constant dense<0.000000e+00> : vector<8x8xf32>
    %28 = tpu.matmul %26, %27, %cst_18 {dimension_numbers = #tpu.dot_dimension_numbers<[1], [1], [0], [0], [0, 0, 1, 0], [], []>} : vector<8x128xbf16>, vector<8x128xbf16>, vector<8x8xf32> -> vector<8x8xf32>
    %c0_19 = arith.constant 0 : index
    %c0_20 = arith.constant 0 : index
    %29 = vector.load %arg6[%c0_19, %c0_20] : memref<8x1xf32, #tpu.memory_space<vmem>>, vector<8x1xf32>
    %30 = vector.broadcast %29 : vector<8x1xf32> to vector<8x8xf32>
    %31 = arith.addf %28, %30 : vector<8x8xf32>
    %32 = arith.negf %31 : vector<8x8xf32>
    %33 = math.exp %32 : vector<8x8xf32>
    %cst_21 = arith.constant 1.000000e+00 : f32
    %34 = vector.broadcast %cst_21 : f32 to vector<8x8xf32>
    %35 = arith.addf %34, %33 : vector<8x8xf32>
    %36 = arith.divf %34, %35 : vector<8x8xf32>
    %c0_22 = arith.constant 0 : index
    %c0_23 = arith.constant 0 : index
    %37 = vector.load %arg7[%c0_22, %c0_23] : memref<8x8xf32, #tpu.memory_space<vmem>>, vector<8x8xf32>
    tpu.vector_store %arg7[%c0_22, %c0_23], %36 {strides = array<i32>} : memref<8x8xf32, #tpu.memory_space<vmem>>, vector<8x8xf32>,
    return
  }
  func.func @transform_0(%arg0: i32) -> (i32, i32) {
    %c0_i32 = arith.constant 0 : i32
    %c0_i32_0 = arith.constant 0 : i32
    return %arg0, %c0_i32 : i32, i32
  }
  func.func @transform_1(%arg0: i32) -> (i32, i32) {
    %c0_i32 = arith.constant 0 : i32
    %c0_i32_0 = arith.constant 0 : i32
    %c0_i32_1 = arith.constant 0 : i32
    return %c0_i32, %c0_i32_0 : i32, i32
  }
  func.func @transform_2(%arg0: i32) -> (i32, i32, i32) {
    %c0_i32 = arith.constant 0 : i32
    %c0_i32_0 = arith.constant 0 : i32
    %c0_i32_1 = arith.constant 0 : i32
    %c0_i32_2 = arith.constant 0 : i32
    return %c0_i32, %c0_i32_0, %c0_i32_1 : i32, i32, i32
  }
  func.func @transform_3(%arg0: i32) -> (i32, i32) {
    %c0_i32 = arith.constant 0 : i32
    %c0_i32_0 = arith.constant 0 : i32
    %c0_i32_1 = arith.constant 0 : i32
    return %c0_i32, %c0_i32_0 : i32, i32
  }
  func.func @transform_4(%arg0: i32) -> (i32, i32) {
    %c0_i32 = arith.constant 0 : i32
    %c0_i32_0 = arith.constant 0 : i32
    %c0_i32_1 = arith.constant 0 : i32
    return %c0_i32, %c0_i32_0 : i32, i32
  }
  func.func @transform_5(%arg0: i32) -> (i32, i32) {
    %c0_i32 = arith.constant 0 : i32
    %c0_i32_0 = arith.constant 0 : i32
    %c0_i32_1 = arith.constant 0 : i32
    return %c0_i32, %c0_i32_0 : i32, i32
  }
  func.func @transform_6(%arg0: i32) -> (i32, i32) {
    %c0_i32 = arith.constant 0 : i32
    %c0_i32_0 = arith.constant 0 : i32
    return %c0_i32, %arg0 : i32, i32
  }
}

</mosaic_0001>

<bundles_post_ra>
// kernel: actor_forward.1
= control target key start
LH: loop header
LB: loop body
LE: loop exit
PB: predicated region body
PF: predicated region fallthrough
CT: control target
= control target key end

     0   :  { %11 = vsyncpa [#allocation3], 0  ;;  %s680_s0 = inlined_call_operand.vmem [shape: f32[8,16], index: 0, kind: input, shape index: {}]   ;;  %s681_s1 = inlined_call_operand.vmem [shape: bf16[16,128], index: 1, kind: input, shape index: {}]   ;;  %s682_s2 = inlined_call_operand.hbm [shape: bf16[2,128,128], index: 2, kind: input, shape index: {}]   ;;  %s683_s3 = inlined_call_operand.hbm [shape: f32[3,128], index: 3, kind: input, shape index: {}]   ;;  %s684_s4 = inlined_call_operand.vmem [shape: bf16[8,128], index: 4, kind: input, shape index: {}]   ;;  %s685_s5 = inlined_call_operand.vmem [shape: f32[8,1], index: 5, kind: input, shape index: {}]   ;;  %s686_s6 = inlined_call_operand.vmem [shape: f32[8,8], index: 6, kind: output, shape index: {}]  }
   0x1   :  { %12 = vsyncpa [#allocation5], 0  ;;  %s573_s21 = smov [#allocation2]   ;;  %s525_s25 = scalar_lea.hbm %s682_s2, 2048 }
   0x2   :  { %s22_s22 = sshll.u32 %s573_s21, 4  ;;  %p526_p0 = scmp.ne.s32.totalorder %s682_s2, %s525_s25  ;;  %s23_s22 = int_to_ptr.vmem [resolvable:$true] %s22_s22 }
   0x3   :  { %p529_p1 = scmp.lt.u32.totalorder %s525_s25, %s682_s2 }
   0x5   :  { %p531_p2 = pnand %p529_p1, %p526_p0 }
   0x7   :  { %534 = shalt.err (!%p531_p2)
}
   0x8   :  { %s535_s30 = scalar_lea.vmem %s23_s22, 2048  ;;  %p540_p4 = scmp.lt.s32.totalorder %s23_s22, %s23_s22 }
   0x9   :  { %p536_p3 = scmp.ne.s32.totalorder %s23_s22, %s535_s30  ;;  %p541_p5 = scmp.lt.s32.totalorder %s535_s30, %s535_s30 }
   0xb   :  { %p542_p6 = por %p541_p5, %p540_p4 }
   0xd   :  { %p543_p7 = pnand %p542_p6, %p536_p3 }
   0xf   :  { %546 = shalt.err (!%p543_p7)
}
  0x10   :  { %s574_s7 = smov 64   ;;  %s575_s8 = smov 4  }
  0x11   :  { %28 = dma.hbm_to_vmem [thread:$0]  %s682_s2, 2048, %s23_s22, [#allocation3], %s574_s7, %s574_s7, %s575_s8  }
  0x12   :  { %s576_s11 = smov [#allocation4]   ;;  %s547_s15 = scalar_lea.hbm %s683_s3, 64 }
  0x13   :  { %s35_s12 = sshll.u32 %s576_s11, 4  ;;  %p548_p8 = scmp.ne.s32.totalorder %s683_s3, %s547_s15  ;;  %s36_s12 = int_to_ptr.vmem [resolvable:$true] %s35_s12 }
  0x14   :  { %p551_p9 = scmp.lt.u32.totalorder %s547_s15, %s683_s3 }
  0x16   :  { %p553_p10 = pnand %p551_p9, %p548_p8 }
  0x18   :  { %556 = shalt.err (!%p553_p10)
}
  0x19   :  { %s557_s20 = scalar_lea.vmem %s36_s12, 64  ;;  %p562_p12 = scmp.lt.s32.totalorder %s36_s12, %s36_s12 }
  0x1a   :  { %p558_p11 = scmp.ne.s32.totalorder %s36_s12, %s557_s20  ;;  %p563_p13 = scmp.lt.s32.totalorder %s557_s20, %s557_s20 }
  0x1c   :  { %p564_p0 = por %p563_p13, %p562_p12 }
  0x1e   :  { %p565_p1 = pnand %p564_p0, %p558_p11 }
  0x20   :  { %568 = shalt.err (!%p565_p1)
}
  0x21   :  { %38 = dma.hbm_to_vmem [thread:$0]  %s683_s3, 64, %s36_s12, [#allocation5]  }
  0x22   :  { %569 = dma.done.wait [#allocation3], 2048  }
  0x23   :  { %570 = vsyncadd [#allocation3], 4294965248 }
  0x24   :  { %571 = dma.done.wait [#allocation5], 64  }
  0x25   :  { %572 = vsyncadd [#allocation5], 4294967232  ;;  %v577_v0 = vmov 0.0   ;;  %vm578_vm0 = vmmov 0   ;;  %v500_v1 = vld [vmem:[%s681_s1] sm:$0xff]   ;;  %vm65_vm1 = vcmask 130048  }
  0x26   :  { %440 = vmatprep.subr.bf16.mxu0 %v577_v0  ;;  %442 = vmatprep.mubr.msk.bf16.mxu0 %vm578_vm0, %v577_v0  ;;  %v50_v2 = vld [vmem:[%s680_s0] sm:$0xff]  ;;  %v502_v5 = vld [vmem:[#allocation2 + $0x8] sm:$0xff]   ;;  %v503_v6 = vld [vmem:[#allocation2 + $0x10] sm:$0xff]   ;;  %v579_v38 = vmov 0   ;;  %vm388_vm2 = vcmask 64512  }
  0x27   :  { %446 = vmatprep.subr.bf16.mxu1 %v577_v0  ;;  %462 = vmatprep.mubr.msk.bf16.mxu1 %vm578_vm0, %v577_v0  ;;  %v51_v3 = vpack.c.bf16 %v50_v2, %v50_v2  ;;  %v501_v4 = vld [vmem:[#allocation2] sm:$0xff]   ;;  %v504_v7 = vld [vmem:[#allocation2 + $0x18] sm:$0xff]   ;;  %v506_v9 = vld [vmem:[#allocation2 + $0x28] sm:$0xff]  }
  0x28   :  { %441 = vmatpush3.bf16.msra.mxu0 %v500_v1  ;;  %447 = vmatpush3.bf16.msra.mxu1 %v501_v4  ;;  %v505_v8 = vld [vmem:[#allocation2 + $0x20] sm:$0xff]   ;;  %v507_v10 = vld [vmem:[#allocation2 + $0x30] sm:$0xff]   ;;  %v508_v11 = vld [vmem:[#allocation2 + $0x38] sm:$0xff]  }
  0x29   :  { %466 = vmatprep.subr.bf16.mxu0 %v577_v0  ;;  %448 = vmatprep.subr.bf16.mxu1 %v577_v0  ;;  %v509_v12 = vld [vmem:[#allocation2 + $0x40] sm:$0xff]   ;;  %v510_v13 = vld [vmem:[#allocation2 + $0x48] sm:$0xff]   ;;  %v511_v14 = vld [vmem:[#allocation2 + $0x50] sm:$0xff]  }
  0x2a   :  { %v512_v15 = vld [vmem:[#allocation2 + $0x58] sm:$0xff]   ;;  %v396_v16 = vld [vmem:[#allocation4] ss:$0 sm:$0xff]  ;;  %v514_v26 = vld [vmem:[#allocation2 + $0x68] sm:$0xff]   ;;  %499 = vset.pattern.permute.xlu0 %v579_v38 }
  0x2b   :  { %443 = vmatmul.mubr.msk.bf16.vlgmr.msra.gmra.mrb[0].mxu0 %vm65_vm1, %v51_v3  ;;  %v513_v25 = vld [vmem:[#allocation2 + $0x60] sm:$0xff]   ;;  %v515_v27 = vld [vmem:[#allocation2 + $0x70] sm:$0xff]   ;;  %v516_v28 = vld [vmem:[#allocation2 + $0x78] sm:$0xff]  }
  0x2c   :  { %482 = vmatprep.mubr.msk.bf16.mxu0 %vm578_vm0, %v577_v0  ;;  %449 = vmatpush3.bf16.msra.mxu1 %v502_v5  ;;  %v399_v29 = vld [vmem:[#allocation4 + $0x1] ss:$0 sm:$0xff]  ;;  %v408_v39 = vld [vmem:[#allocation4 + $0x2] ss:$0 sm:$0xff] }
  0x2d   :  { %450 = vmatprep.subr.bf16.mxu1 %v577_v0  ;;  %467 = vmatpush3.bf16.msra.mxu0 %v509_v12  ;;  %v336_v37 = vld [vmem:[%s685_s5] sm:$0xff] }
  0x2e   :  { %468 = vmatprep.subr.bf16.mxu0 %v577_v0  ;;  %339 = vperm.xlu0 %499, %v336_v37   ;;  %v334_v47 = vld [vmem:[%s684_s4] sm:$0xf] }
  0x30   :  { %451 = vmatpush3.bf16.msra.mxu1 %v503_v6 }
  0x31   :  { %452 = vmatprep.subr.bf16.mxu1 %v577_v0  ;;  %469 = vmatpush3.bf16.msra.mxu0 %v510_v13 }
  0x32   :  { %470 = vmatprep.subr.bf16.mxu0 %v577_v0 }
  0x34   :  { %453 = vmatpush3.bf16.msra.mxu1 %v504_v7 }
  0x35   :  { %454 = vmatprep.subr.bf16.mxu1 %v577_v0  ;;  %471 = vmatpush3.bf16.msra.mxu0 %v511_v14 }
  0x36   :  { %472 = vmatprep.subr.bf16.mxu0 %v577_v0 }
  0x38   :  { %455 = vmatpush3.bf16.msra.mxu1 %v505_v8 }
  0x39   :  { %456 = vmatprep.subr.bf16.mxu1 %v577_v0  ;;  %473 = vmatpush3.bf16.msra.mxu0 %v512_v15 }
  0x3a   :  { %474 = vmatprep.subr.bf16.mxu0 %v577_v0 }
  0x3c   :  { %457 = vmatpush3.bf16.msra.mxu1 %v506_v9 }
  0x3d   :  { %458 = vmatprep.subr.bf16.mxu1 %v577_v0  ;;  %475 = vmatpush3.bf16.msra.mxu0 %v513_v25 }
  0x3e   :  { %476 = vmatprep.subr.bf16.mxu0 %v577_v0 }
  0x40   :  { %459 = vmatpush3.bf16.msra.mxu1 %v507_v10 }
  0x41   :  { %460 = vmatprep.subr.bf16.mxu1 %v577_v0  ;;  %477 = vmatpush3.bf16.msra.mxu0 %v514_v26 }
  0x42   :  { %478 = vmatprep.subr.bf16.mxu0 %v577_v0 }
  0x44   :  { %461 = vmatpush3.bf16.msra.mxu1 %v508_v11 }
  0x45   :  { %486 = vmatprep.subr.bf16.mxu1 %v577_v0  ;;  %479 = vmatpush3.bf16.msra.mxu0 %v515_v27 }
  0x46   :  { %480 = vmatprep.subr.bf16.mxu0 %v577_v0 }
  0x49   :  { %481 = vmatpush3.bf16.msra.mxu0 %v516_v28 }
  0xad   :  { %v340_v48 = vpop.permute.xlu0 %339 }
  0xfe   :  { %v103_v17 = vpop.f32.mrb[0].mxu0 }
  0xff   :  { %v104_v18 = vadd.f32 %v396_v16, %v103_v17  ;;  %v444_v19 = vpop.f32.mrb[1].mxu0 }
 0x100   :  { %v106_v20 = vpop.f32.mrb[2].mxu0 }
 0x101   :  { %v109_v21 = vmul.f32 0.2, %v104_v18  ;;  %v445_v22 = vpop.f32.mrb[3].mxu0 }
 0x103   :  { %v110_v23 = vmax.f32 %v104_v18, %v109_v21 }
 0x105   :  { %v111_v24 = vpack.c.bf16 %v110_v23, %v110_v23 }
 0x107   :  { %463 = vmatmul.mubr.bf16.vlgmr.msra.gmra.mrb[0].mxu1 %v111_v24 }
 0x108   :  { %488 = vmatprep.mubr.msk.bf16.mxu1 %vm578_vm0, %v577_v0 }
 0x1da   :  { %v215_v30 = vpop.f32.mrb[0].mxu1 }
 0x1db   :  { %v216_v31 = vadd.f32 %v399_v29, %v215_v30  ;;  %v464_v32 = vpop.f32.mrb[1].mxu1 }
 0x1dc   :  { %v218_v33 = vpop.f32.mrb[2].mxu1 }
 0x1dd   :  { %517 = vtanh.f32 %v216_v31  ;;  %v465_v34 = vpop.f32.mrb[3].mxu1 }
 0x1e7   :  { %v518_v35 = vpop.eup %517 }
 0x1e8   :  { %v222_v36 = vpack.c.bf16 %v518_v35, %v518_v35 }
 0x1ea   :  { %483 = vmatmul.mubr.bf16.vlgmr.msra.gmra.mrb[4].mxu0 %v222_v36 }
 0x2bd   :  { %v327_v40 = vpop.f32.mrb[4].mxu0 }
 0x2be   :  { %v328_v41 = vadd.f32 %v408_v39, %v327_v40  ;;  %v484_v42 = vpop.f32.mrb[5].mxu0 }
 0x2bf   :  { %v330_v43 = vpop.f32.mrb[6].mxu0 }
 0x2c0   :  { %519 = vtanh.f32 %v328_v41  ;;  %v485_v44 = vpop.f32.mrb[7].mxu0 }
 0x2ca   :  { %v520_v45 = vpop.eup %519 }
 0x2cb   :  { %v335_v46 = vpack.c.bf16 %v520_v45, %v520_v45 }
 0x2cd   :  { %487 = vmatpush3.bf16.xpose.msra.mxu1 %v335_v46 }
 0x2d4   :  { %489 = vmatmul.mubr.bf16.vlgmr.msra.gmra.mrb[4].mxu1 %v334_v47 }
 0x3a7   :  { %v376_v49 = vpop.f32.mrb[4].mxu1 }
 0x3a8   :  { %v377_v50 = vadd.f32 %v376_v49, %v340_v48  ;;  %v490_v51 = vpop.f32.mrb[5].mxu1 }
 0x3a9   :  { %v379_v52 = vpop.f32.mrb[6].mxu1 }
 0x3aa   :  { %v417_v53 = vmul.f32 -1.442695, %v377_v50  ;;  %v491_v54 = vpop.f32.mrb[7].mxu1 }
 0x3ac   :  { %521 = vpow2.f32 %v417_v53 }
 0x3b6   :  { %v522_v55 = vpop.eup %521 }
 0x3b7   :  { %v385_v56 = vadd.f32 1.0, %v522_v55 }
 0x3b9   :  { %523 = vrcp.f32 %v385_v56 }
 0x3c3   :  { %v524_v57 = vpop.eup %523 }
 0x3c4   :  { %389 = vst.msk [vmem:[%s686_s6] sm:$0xff] %vm388_vm2, %v524_v57 }
 0x3c5   :  { %394 = vsyncpa [#allocation3], 1 }
 0x3c6   :  { %395 = vsyncpa [#allocation5], 1 }

</bundles_post_ra>
